<compile_context>
chip_gen: v6e
topology: v6e:2x2x1
jax: 0.10.0
libtpu: 0.0.40
codegen_flags: <defaults>
</compile_context>

<pallas_src>
import jax
import jax.numpy as jnp
from jax.experimental import pallas as pl
from jax.experimental.pallas import tpu as pltpu


def _round_up(x, m):
    return ((x + m - 1) // m) * m


def _generator_kernel(x_ref, w1_ref, b1_ref, w2_ref, b2_ref, o_ref):
    # Hidden layer: Linear (bf16 inputs, f32 accumulation on the MXU).
    x = x_ref[...]                                                     # bf16 [TB, Kp]
    h = jnp.dot(x, w1_ref[...], preferred_element_type=jnp.float32)    # f32  [TB, Hp]
    h = h + b1_ref[...]                                                # f32 bias
    h = jnp.where(h > 0, h, 0.2 * h)                                   # LeakyReLU(0.2), f32
    # Dropout(p) -> identity at inference time.
    # Output layer: Linear (cast activation to bf16 for the MXU, f32 acc).
    h = h.astype(jnp.bfloat16)
    out = jnp.dot(h, w2_ref[...], preferred_element_type=jnp.float32)  # f32 [TB, Np]
    out = out + b2_ref[...]
    o_ref[...] = out.astype(o_ref.dtype)                               # bf16 (default) store


def _pad2(a, rows, cols, dtype):
    a = a.astype(dtype)
    return jnp.pad(a, ((0, rows - a.shape[0]), (0, cols - a.shape[1])))


def prepare_generator_params(w1, b1, w2, b2):
    """One-time prep: pad feature dims to 128 and cast weights to bf16.

    Hoisted out of the per-call path so each forward pass does not re-read,
    cast and re-write the weights.
    """
    K, H = w1.shape
    N = w2.shape[1]
    Kp, Hp, Np = _round_up(K, 128), _round_up(H, 128), _round_up(N, 128)
    return {
        "w1": _pad2(w1, Kp, Hp, jnp.bfloat16),
        "b1": _pad2(jnp.reshape(b1, (1, -1)), 1, Hp, jnp.float32),
        "w2": _pad2(w2, Hp, Np, jnp.bfloat16),
        "b2": _pad2(jnp.reshape(b2, (1, -1)), 1, Np, jnp.float32),
        "in_size": K,
        "out_size": N,
    }


def _choose_batch_tile(B, block_b):
    """Batch tile (TB) and padded batch (Bp), both multiples of 16 rows."""
    if B > block_b:
        TB = block_b
        Bp = _round_up(B, TB)
    elif B >= 256:
        # At least 2 grid steps so the "parallel" axis can shard across
        # v7x's two TensorCores; harmless on single-TC v5e/v6e.
        TB = _round_up((B + 1) // 2, 16)
        Bp = 2 * TB
    else:
        TB = _round_up(B, 16)
        Bp = TB
    return TB, Bp


def _build_generator_call(TB, Bp, Kp, Hp, Np, out_dtype, cost, single_buffer_weights):
    if single_buffer_weights:
        # Constant block index across the grid -> one VMEM buffer is enough.
        w_kwargs = {"pipeline_mode": pl.Buffered(1)}
    else:
        w_kwargs = {}
    return pl.pallas_call(
        _generator_kernel,
        out_shape=jax.ShapeDtypeStruct((Bp, Np), out_dtype),
        grid=(Bp // TB,),
        in_specs=[
            pl.BlockSpec((TB, Kp), lambda i: (i, 0)),                # activations: batch-tiled
            pl.BlockSpec((Kp, Hp), lambda i: (0, 0), **w_kwargs),    # weights: VMEM-resident
            pl.BlockSpec((1, Hp), lambda i: (0, 0), **w_kwargs),
            pl.BlockSpec((Hp, Np), lambda i: (0, 0), **w_kwargs),
            pl.BlockSpec((1, Np), lambda i: (0, 0), **w_kwargs),
        ],
        out_specs=pl.BlockSpec((TB, Np), lambda i: (i, 0)),
        compiler_params=pltpu.CompilerParams(
            dimension_semantics=("parallel",)),
        cost_estimate=cost,
    )


def generator_forward(noise, params, *, block_b=1024, out_dtype=jnp.bfloat16):
    """noise: [B, noise_size] -> [B, output_size] (bf16 by default, f32 opt-in)."""
    w1_p, b1_p, w2_p, b2_p = params["w1"], params["b1"], params["w2"], params["b2"]
    N = params["out_size"]
    B, K = noise.shape
    Kp, Hp = w1_p.shape
    Np = w2_p.shape[1]
    assert K == params["in_size"] and Kp == _round_up(K, 128), \
        "prepared params don't match the noise feature dim"

    TB, Bp = _choose_batch_tile(B, block_b)

    x_p = noise.astype(jnp.bfloat16)
    if Bp != B or Kp != K:
        x_p = jnp.pad(x_p, ((0, Bp - B), (0, Kp - K)))

    out_itemsize = jnp.dtype(out_dtype).itemsize
    cost = pl.CostEstimate(
        flops=2 * Bp * (Kp * Hp + Hp * Np),
        transcendentals=0,
        bytes_accessed=(Bp * Kp * 2 + Kp * Hp * 2 + Hp * Np * 2
                        + (Hp + Np) * 4 + Bp * Np * out_itemsize),
    )

    try:
        call = _build_generator_call(TB, Bp, Kp, Hp, Np, out_dtype, cost,
                                     single_buffer_weights=True)
        out_p = call(x_p, w1_p, b1_p, w2_p, b2_p)
    except Exception:
        # Fallback: default (double-buffered) weight specs on Pallas versions
        # that reject pipeline_mode=pl.Buffered(1).
        call = _build_generator_call(TB, Bp, Kp, Hp, Np, out_dtype, cost,
                                     single_buffer_weights=False)
        out_p = call(x_p, w1_p, b1_p, w2_p, b2_p)

    # Slice only when padding actually occurred (avoids a full-output copy).
    if Bp != B or Np != N:
        out_p = out_p[:B, :N]
    return out_p


def init_generator_params(key, noise_size, hidden_size, output_size):
    """Deterministic PyTorch-Linear-like init: U(-1/sqrt(fan_in), 1/sqrt(fan_in))."""
    k1, k2, k3, k4 = jax.random.split(key, 4)
    lim1 = 1.0 / jnp.sqrt(noise_size)
    lim2 = 1.0 / jnp.sqrt(hidden_size)
    # Weights stored [in_features, out_features] (transpose of torch's [out, in]).
    w1 = jax.random.uniform(k1, (noise_size, hidden_size), jnp.float32, -lim1, lim1)
    b1 = jax.random.uniform(k2, (1, hidden_size), jnp.float32, -lim1, lim1)
    w2 = jax.random.uniform(k3, (hidden_size, output_size), jnp.float32, -lim2, lim2)
    b2 = jax.random.uniform(k4, (1, output_size), jnp.float32, -lim2, lim2)
    return w1, b1, w2, b2


if __name__ == "__main__":
    # Small shapes consistent with the module (defaults are 100 -> 512 -> 512).
    batch, noise_size, hidden_size, output_size = 8, 32, 64, 64

    key = jax.random.PRNGKey(0)
    k_noise, k_params = jax.random.split(key)
    noise = jax.random.normal(k_noise, (batch, noise_size), jnp.float32)
    w1, b1, w2, b2 = init_generator_params(
        k_params, noise_size, hidden_size, output_size)

    # One-time weight prep (pad + bf16 cast), hoisted out of the forward pass.
    params = prepare_generator_params(w1, b1, w2, b2)

    out = generator_forward(noise, params)
    jax.block_until_ready(out)
    assert out.shape == (batch, output_size)
    assert out.dtype == jnp.bfloat16
    out_f32 = out.astype(jnp.float32)

    # Reference 1: same bf16-input / f32-accum recipe in plain JAX (tight check).
    xb = noise.astype(jnp.bfloat16)
    w1b = w1.astype(jnp.bfloat16)
    w2b = w2.astype(jnp.bfloat16)
    h_ref = jnp.dot(xb, w1b, preferred_element_type=jnp.float32) + b1
    h_ref = jnp.where(h_ref > 0, h_ref, 0.2 * h_ref).astype(jnp.bfloat16)
    ref_bf16 = jnp.dot(h_ref, w2b, preferred_element_type=jnp.float32) + b2
    assert jnp.allclose(out_f32, ref_bf16, atol=2e-2, rtol=2e-2)

    # Reference 2: pure f32 semantics of the PyTorch module (loose check,
    # accounts for bf16 rounding of weights/activations/output).
    h32 = noise @ w1 + b1
    h32 = jnp.where(h32 > 0, h32, 0.2 * h32)
    ref_f32 = h32 @ w2 + b2
    assert jnp.allclose(out_f32, ref_f32, atol=1e-1, rtol=1e-1)

    # Second run: moderate batch exercises the >=2-grid-step + padded-batch path.
    big_b = 300
    noise_big = jax.random.normal(jax.random.PRNGKey(1), (big_b, noise_size), jnp.float32)
    out_big = generator_forward(noise_big, params)
    jax.block_until_ready(out_big)
    assert out_big.shape == (big_b, output_size)
    h32b = noise_big @ w1 + b1
    h32b = jnp.where(h32b > 0, h32b, 0.2 * h32b)
    ref_big = h32b @ w2 + b2
    assert jnp.allclose(out_big.astype(jnp.float32), ref_big, atol=1e-1, rtol=1e-1)

    print("KERNEL_OK")
</pallas_src>

<mosaic_0001>
module attributes {stable_mosaic.version = 11 : i64} {
  func.func @_generator_kernel(%arg0: i32, %arg1: memref<16x128xbf16, #tpu.memory_space<vmem>>, %arg2: memref<128x128xbf16, #tpu.memory_space<vmem>>, %arg3: memref<1x128xf32, #tpu.memory_space<vmem>>, %arg4: memref<128x128xbf16, #tpu.memory_space<vmem>>, %arg5: memref<1x128xf32, #tpu.memory_space<vmem>>, %arg6: memref<16x128xbf16, #tpu.memory_space<vmem>>) attributes {dimension_semantics = [#tpu.dimension_semantics<parallel>], iteration_bounds = array<i64: 1>, scalar_prefetch = 0 : i64, scratch_operands = 0 : i64, tpu.core_type = #tpu.core_type<tc>, window_params = [{transform_indices = @transform_0, window_bounds = array<i64: 16, 128>}, {pipeline_mode = #tpu.pipeline_mode<synchronous>, transform_indices = @transform_1, window_bounds = array<i64: 128, 128>}, {pipeline_mode = #tpu.pipeline_mode<synchronous>, transform_indices = @transform_2, window_bounds = array<i64: 1, 128>}, {pipeline_mode = #tpu.pipeline_mode<synchronous>, transform_indices = @transform_3, window_bounds = array<i64: 128, 128>}, {pipeline_mode = #tpu.pipeline_mode<synchronous>, transform_indices = @transform_4, window_bounds = array<i64: 1, 128>}, {transform_indices = @transform_5, window_bounds = array<i64: 16, 128>}]} {
    %c0 = arith.constant 0 : index
    %c0_0 = arith.constant 0 : index
    %0 = vector.load %arg1[%c0, %c0_0] : memref<16x128xbf16, #tpu.memory_space<vmem>>, vector<16x128xbf16>
    %c0_1 = arith.constant 0 : index
    %c0_2 = arith.constant 0 : index
    %1 = vector.load %arg2[%c0_1, %c0_2] : memref<128x128xbf16, #tpu.memory_space<vmem>>, vector<128x128xbf16>
    %cst = arith.constant dense<0.000000e+00> : vector<16x128xf32>
    %2 = tpu.matmul %0, %1, %cst {dimension_numbers = #tpu.dot_dimension_numbers<[1], [0], [0], [1], [0, 0, 1, 1], [], []>} : vector<16x128xbf16>, vector<128x128xbf16>, vector<16x128xf32> -> vector<16x128xf32>
    %c0_3 = arith.constant 0 : index
    %c0_4 = arith.constant 0 : index
    %3 = vector.load %arg3[%c0_3, %c0_4] : memref<1x128xf32, #tpu.memory_space<vmem>>, vector<1x128xf32>
    %4 = vector.broadcast %3 : vector<1x128xf32> to vector<16x128xf32>
    %5 = arith.addf %2, %4 : vector<16x128xf32>
    %cst_5 = arith.constant 0.000000e+00 : f32
    %6 = vector.broadcast %cst_5 : f32 to vector<16x128xf32>
    %7 = arith.cmpf ogt, %5, %6 : vector<16x128xf32>
    %cst_6 = arith.constant 2.000000e-01 : f32
    %8 = vector.broadcast %cst_6 : f32 to vector<16x128xf32>
    %9 = arith.mulf %8, %5 : vector<16x128xf32>
    %10 = arith.select %7, %5, %9 : vector<16x128xi1>, vector<16x128xf32>
    %11 = arith.truncf %10 : vector<16x128xf32> to vector<16x128xbf16>
    %c0_7 = arith.constant 0 : index
    %c0_8 = arith.constant 0 : index
    %12 = vector.load %arg4[%c0_7, %c0_8] : memref<128x128xbf16, #tpu.memory_space<vmem>>, vector<128x128xbf16>
    %cst_9 = arith.constant dense<0.000000e+00> : vector<16x128xf32>
    %13 = tpu.matmul %11, %12, %cst_9 {dimension_numbers = #tpu.dot_dimension_numbers<[1], [0], [0], [1], [0, 0, 1, 1], [], []>} : vector<16x128xbf16>, vector<128x128xbf16>, vector<16x128xf32> -> vector<16x128xf32>
    %c0_10 = arith.constant 0 : index
    %c0_11 = arith.constant 0 : index
    %14 = vector.load %arg5[%c0_10, %c0_11] : memref<1x128xf32, #tpu.memory_space<vmem>>, vector<1x128xf32>
    %15 = vector.broadcast %14 : vector<1x128xf32> to vector<16x128xf32>
    %16 = arith.addf %13, %15 : vector<16x128xf32>
    %17 = arith.truncf %16 : vector<16x128xf32> to vector<16x128xbf16>
    %c0_12 = arith.constant 0 : index
    %c0_13 = arith.constant 0 : index
    %18 = vector.load %arg6[%c0_12, %c0_13] : memref<16x128xbf16, #tpu.memory_space<vmem>>, vector<16x128xbf16>
    tpu.vector_store %arg6[%c0_12, %c0_13], %17 {strides = array<i32>} : memref<16x128xbf16, #tpu.memory_space<vmem>>, vector<16x128xbf16>,
    return
  }
  func.func @transform_0(%arg0: i32) -> (i32, i32) {
    %c0_i32 = arith.constant 0 : i32
    %c0_i32_0 = arith.constant 0 : i32
    return %arg0, %c0_i32 : i32, i32
  }
  func.func @transform_1(%arg0: i32) -> (i32, i32) {
    %c0_i32 = arith.constant 0 : i32
    %c0_i32_0 = arith.constant 0 : i32
    %c0_i32_1 = arith.constant 0 : i32
    return %c0_i32, %c0_i32_0 : i32, i32
  }
  func.func @transform_2(%arg0: i32) -> (i32, i32) {
    %c0_i32 = arith.constant 0 : i32
    %c0_i32_0 = arith.constant 0 : i32
    %c0_i32_1 = arith.constant 0 : i32
    return %c0_i32, %c0_i32_0 : i32, i32
  }
  func.func @transform_3(%arg0: i32) -> (i32, i32) {
    %c0_i32 = arith.constant 0 : i32
    %c0_i32_0 = arith.constant 0 : i32
    %c0_i32_1 = arith.constant 0 : i32
    return %c0_i32, %c0_i32_0 : i32, i32
  }
  func.func @transform_4(%arg0: i32) -> (i32, i32) {
    %c0_i32 = arith.constant 0 : i32
    %c0_i32_0 = arith.constant 0 : i32
    %c0_i32_1 = arith.constant 0 : i32
    return %c0_i32, %c0_i32_0 : i32, i32
  }
  func.func @transform_5(%arg0: i32) -> (i32, i32) {
    %c0_i32 = arith.constant 0 : i32
    %c0_i32_0 = arith.constant 0 : i32
    return %arg0, %c0_i32 : i32, i32
  }
}

module attributes {stable_mosaic.version = 11 : i64} {
  func.func @_generator_kernel(%arg0: i32, %arg1: memref<16x128xbf16, #tpu.memory_space<vmem>>, %arg2: memref<128x128xbf16, #tpu.memory_space<vmem>>, %arg3: memref<1x128xf32, #tpu.memory_space<vmem>>, %arg4: memref<128x128xbf16, #tpu.memory_space<vmem>>, %arg5: memref<1x128xf32, #tpu.memory_space<vmem>>, %arg6: memref<16x128xbf16, #tpu.memory_space<vmem>>) attributes {dimension_semantics = [#tpu.dimension_semantics<parallel>], iteration_bounds = array<i64: 1>, scalar_prefetch = 0 : i64, scratch_operands = 0 : i64, tpu.core_type = #tpu.core_type<tc>, window_params = [{transform_indices = @transform_0, window_bounds = array<i64: 16, 128>}, {pipeline_mode = #tpu.pipeline_mode<synchronous>, transform_indices = @transform_1, window_bounds = array<i64: 128, 128>}, {pipeline_mode = #tpu.pipeline_mode<synchronous>, transform_indices = @transform_2, window_bounds = array<i64: 1, 128>}, {pipeline_mode = #tpu.pipeline_mode<synchronous>, transform_indices = @transform_3, window_bounds = array<i64: 128, 128>}, {pipeline_mode = #tpu.pipeline_mode<synchronous>, transform_indices = @transform_4, window_bounds = array<i64: 1, 128>}, {transform_indices = @transform_5, window_bounds = array<i64: 16, 128>}]} {
    %c0 = arith.constant 0 : index
    %c0_0 = arith.constant 0 : index
    %0 = vector.load %arg1[%c0, %c0_0] : memref<16x128xbf16, #tpu.memory_space<vmem>>, vector<16x128xbf16>
    %c0_1 = arith.constant 0 : index
    %c0_2 = arith.constant 0 : index
    %1 = vector.load %arg2[%c0_1, %c0_2] : memref<128x128xbf16, #tpu.memory_space<vmem>>, vector<128x128xbf16>
    %cst = arith.constant dense<0.000000e+00> : vector<16x128xf32>
    %2 = tpu.matmul %0, %1, %cst {dimension_numbers = #tpu.dot_dimension_numbers<[1], [0], [0], [1], [0, 0, 1, 1], [], []>} : vector<16x128xbf16>, vector<128x128xbf16>, vector<16x128xf32> -> vector<16x128xf32>
    %c0_3 = arith.constant 0 : index
    %c0_4 = arith.constant 0 : index
    %3 = vector.load %arg3[%c0_3, %c0_4] : memref<1x128xf32, #tpu.memory_space<vmem>>, vector<1x128xf32>
    %4 = vector.broadcast %3 : vector<1x128xf32> to vector<16x128xf32>
    %5 = arith.addf %2, %4 : vector<16x128xf32>
    %cst_5 = arith.constant 0.000000e+00 : f32
    %6 = vector.broadcast %cst_5 : f32 to vector<16x128xf32>
    %7 = arith.cmpf ogt, %5, %6 : vector<16x128xf32>
    %cst_6 = arith.constant 2.000000e-01 : f32
    %8 = vector.broadcast %cst_6 : f32 to vector<16x128xf32>
    %9 = arith.mulf %8, %5 : vector<16x128xf32>
    %10 = arith.select %7, %5, %9 : vector<16x128xi1>, vector<16x128xf32>
    %11 = arith.truncf %10 : vector<16x128xf32> to vector<16x128xbf16>
    %c0_7 = arith.constant 0 : index
    %c0_8 = arith.constant 0 : index
    %12 = vector.load %arg4[%c0_7, %c0_8] : memref<128x128xbf16, #tpu.memory_space<vmem>>, vector<128x128xbf16>
    %cst_9 = arith.constant dense<0.000000e+00> : vector<16x128xf32>
    %13 = tpu.matmul %11, %12, %cst_9 {dimension_numbers = #tpu.dot_dimension_numbers<[1], [0], [0], [1], [0, 0, 1, 1], [], []>} : vector<16x128xbf16>, vector<128x128xbf16>, vector<16x128xf32> -> vector<16x128xf32>
    %c0_10 = arith.constant 0 : index
    %c0_11 = arith.constant 0 : index
    %14 = vector.load %arg5[%c0_10, %c0_11] : memref<1x128xf32, #tpu.memory_space<vmem>>, vector<1x128xf32>
    %15 = vector.broadcast %14 : vector<1x128xf32> to vector<16x128xf32>
    %16 = arith.addf %13, %15 : vector<16x128xf32>
    %17 = arith.truncf %16 : vector<16x128xf32> to vector<16x128xbf16>
    %c0_12 = arith.constant 0 : index
    %c0_13 = arith.constant 0 : index
    %18 = vector.load %arg6[%c0_12, %c0_13] : memref<16x128xbf16, #tpu.memory_space<vmem>>, vector<16x128xbf16>
    tpu.vector_store %arg6[%c0_12, %c0_13], %17 {strides = array<i32>} : memref<16x128xbf16, #tpu.memory_space<vmem>>, vector<16x128xbf16>,
    return
  }
  func.func @transform_0(%arg0: i32) -> (i32, i32) {
    %c0_i32 = arith.constant 0 : i32
    %c0_i32_0 = arith.constant 0 : i32
    return %arg0, %c0_i32 : i32, i32
  }
  func.func @transform_1(%arg0: i32) -> (i32, i32) {
    %c0_i32 = arith.constant 0 : i32
    %c0_i32_0 = arith.constant 0 : i32
    %c0_i32_1 = arith.constant 0 : i32
    return %c0_i32, %c0_i32_0 : i32, i32
  }
  func.func @transform_2(%arg0: i32) -> (i32, i32) {
    %c0_i32 = arith.constant 0 : i32
    %c0_i32_0 = arith.constant 0 : i32
    %c0_i32_1 = arith.constant 0 : i32
    return %c0_i32, %c0_i32_0 : i32, i32
  }
  func.func @transform_3(%arg0: i32) -> (i32, i32) {
    %c0_i32 = arith.constant 0 : i32
    %c0_i32_0 = arith.constant 0 : i32
    %c0_i32_1 = arith.constant 0 : i32
    return %c0_i32, %c0_i32_0 : i32, i32
  }
  func.func @transform_4(%arg0: i32) -> (i32, i32) {
    %c0_i32 = arith.constant 0 : i32
    %c0_i32_0 = arith.constant 0 : i32
    %c0_i32_1 = arith.constant 0 : i32
    return %c0_i32, %c0_i32_0 : i32, i32
  }
  func.func @transform_5(%arg0: i32) -> (i32, i32) {
    %c0_i32 = arith.constant 0 : i32
    %c0_i32_0 = arith.constant 0 : i32
    return %arg0, %c0_i32 : i32, i32
  }
}

</mosaic_0001>

<bundles_post_ra>
// kernel: tpu_custom_call.1
= control target key start
LH: loop header
LB: loop body
LE: loop exit
PB: predicated region body
PF: predicated region fallthrough
CT: control target
= control target key end

     0   :  { %10 = vsyncpa [#allocation3], 0  ;;  %s595_s0 = inlined_call_operand.hbm [shape: bf16[16,128], index: 0, kind: input, shape index: {}]   ;;  %s596_s1 = inlined_call_operand.hbm [shape: bf16[128,128], index: 1, kind: input, shape index: {}]   ;;  %s597_s2 = inlined_call_operand.vmem [shape: f32[1,128], index: 2, kind: input, shape index: {}]   ;;  %s598_s3 = inlined_call_operand.hbm [shape: bf16[128,128], index: 3, kind: input, shape index: {}]   ;;  %s599_s4 = inlined_call_operand.vmem [shape: f32[1,128], index: 4, kind: input, shape index: {}]   ;;  %s600_s5 = inlined_call_operand.hbm [shape: bf16[16,128], index: 5, kind: output, shape index: {}]  }
   0x1   :  { %11 = vsyncpa [#allocation6], 0 }
   0x2   :  { %12 = vsyncpa [#allocation4], 0  ;;  %s527_s18 = smov [#allocation5]   ;;  %s528_s20 = smov [#allocation2]  }
   0x3   :  { %s30_s19 = sshll.u32 %s527_s18, 4  ;;  %s18_s21 = sshll.u32 %s528_s20, 4  ;;  %s31_s19 = int_to_ptr.vmem [resolvable:$true] %s30_s19  ;;  %s19_s21 = int_to_ptr.vmem [resolvable:$true] %s18_s21 }
   0x4   :  { %s449_s22 = scalar_lea.vmem %s31_s19, 1024  ;;  %p454_p1 = scmp.lt.s32.totalorder %s31_s19, %s31_s19 }
   0x5   :  { %p450_p0 = scmp.ne.s32.totalorder %s31_s19, %s449_s22  ;;  %p455_p2 = scmp.lt.s32.totalorder %s449_s22, %s449_s22 }
   0x7   :  { %p456_p3 = por %p455_p2, %p454_p1 }
   0x9   :  { %p457_p4 = pnand %p456_p3, %p450_p0 }
   0xb   :  { %460 = shalt.err (!%p457_p4)
}
   0xc   :  { %s529_s23 = smov 64   ;;  %s530_s24 = smov 4  }
   0xd   :  { %36 = dma.hbm_to_vmem [thread:$0]  %s596_s1, 1024, %s31_s19, [#allocation6], %s529_s23, %s529_s23, %s530_s24  }
   0xe   :  { %s469_s27 = scalar_lea.vmem %s19_s21, 128  ;;  %p474_p6 = scmp.lt.s32.totalorder %s19_s21, %s19_s21 }
   0xf   :  { %p470_p5 = scmp.ne.s32.totalorder %s19_s21, %s469_s27  ;;  %p475_p7 = scmp.lt.s32.totalorder %s469_s27, %s469_s27 }
  0x11   :  { %p476_p8 = por %p475_p7, %p474_p6 }
  0x13   :  { %p477_p9 = pnand %p476_p8, %p470_p5 }
  0x15   :  { %480 = shalt.err (!%p477_p9)
}
  0x16   :  { %24 = dma.hbm_to_vmem [thread:$0]  %s595_s0, 128, %s19_s21, [#allocation3], %s529_s23, %s529_s23, %s530_s24  }
  0x17   :  { %s531_s30 = smov [#allocation7]  }
  0x18   :  { %s44_s6 = sshll.u32 %s531_s30, 4  ;;  %s45_s6 = int_to_ptr.vmem [resolvable:$true] %s44_s6 }
  0x19   :  { %s489_s7 = scalar_lea.vmem %s45_s6, 1024  ;;  %p494_p11 = scmp.lt.s32.totalorder %s45_s6, %s45_s6 }
  0x1a   :  { %p490_p10 = scmp.ne.s32.totalorder %s45_s6, %s489_s7  ;;  %p495_p12 = scmp.lt.s32.totalorder %s489_s7, %s489_s7 }
  0x1c   :  { %p496_p13 = por %p495_p12, %p494_p11 }
  0x1e   :  { %p497_p0 = pnand %p496_p13, %p490_p10 }
  0x20   :  { %500 = shalt.err (!%p497_p0)
}
  0x21   :  { %50 = dma.hbm_to_vmem [thread:$0]  %s598_s3, 1024, %s45_s6, [#allocation6], %s529_s23, %s529_s23, %s530_s24  }
  0x22   :  { %521 = dma.done.wait [#allocation3], 128  }
  0x23   :  { %522 = vsyncadd [#allocation3], 4294967168 }
  0x24   :  { %523 = dma.done.wait [#allocation6], 2048  }
  0x25   :  { %524 = vsyncadd [#allocation6], 4294965248  ;;  %v532_v0 = vmov 0.0   ;;  %vm533_vm0 = vmmov 0   ;;  %v424_v1 = vld [vmem:[#allocation5 + $0x38] sm:$0xff]   ;;  %v425_v2 = vld [vmem:[#allocation5 + $0x30] sm:$0xff]  }
  0x26   :  { %376 = vmatprep.subr.bf16.mxu0 %v532_v0  ;;  %392 = vmatprep.mubr.msk.bf16.mxu0 %vm533_vm0, %v532_v0  ;;  %v426_v3 = vld [vmem:[#allocation5 + $0x28] sm:$0xff]   ;;  %v433_v4 = vld [vmem:[#allocation7 + $0x38] sm:$0xff]   ;;  %v427_v5 = vld [vmem:[#allocation5 + $0x20] sm:$0xff]  }
  0x27   :  { %396 = vmatprep.subr.bf16.mxu1 %v532_v0  ;;  %412 = vmatprep.mubr.msk.bf16.mxu1 %vm533_vm0, %v532_v0  ;;  %v434_v6 = vld [vmem:[#allocation7 + $0x30] sm:$0xff]   ;;  %v428_v7 = vld [vmem:[#allocation5 + $0x18] sm:$0xff]   ;;  %v435_v8 = vld [vmem:[#allocation7 + $0x28] sm:$0xff]  }
  0x28   :  { %377 = vmatpush3.bf16.msra.mxu0 %v424_v1  ;;  %397 = vmatpush3.bf16.msra.mxu1 %v433_v4  ;;  %v429_v9 = vld [vmem:[#allocation5 + $0x10] sm:$0xff]   ;;  %v436_v10 = vld [vmem:[#allocation7 + $0x20] sm:$0xff]   ;;  %v430_v11 = vld [vmem:[#allocation5 + $0x8] sm:$0xff]  }
  0x29   :  { %378 = vmatprep.subr.bf16.mxu0 %v532_v0  ;;  %398 = vmatprep.subr.bf16.mxu1 %v532_v0  ;;  %v437_v12 = vld [vmem:[#allocation7 + $0x18] sm:$0xff]   ;;  %v431_v13 = vld [vmem:[#allocation5] sm:$0xff]   ;;  %v438_v15 = vld [vmem:[#allocation7 + $0x10] sm:$0xff]  }
  0x2a   :  { %v432_v14 = vld [vmem:[#allocation2] sm:$0xff]   ;;  %v439_v16 = vld [vmem:[#allocation7 + $0x8] sm:$0xff]   ;;  %v440_v17 = vld [vmem:[#allocation7] sm:$0xff]  }
  0x2b   :  { %v330_v18 = vld [vmem:[%s597_s2] ss:$0 sm:$0xff]  ;;  %s534_s2 = smov [#allocation8]  }
  0x2c   :  { %379 = vmatpush3.bf16.msra.mxu0 %v425_v2  ;;  %399 = vmatpush3.bf16.msra.mxu1 %v434_v6  ;;  %v340_v31 = vld [vmem:[%s599_s4] ss:$0 sm:$0xff]  ;;  %s317_s11 = sshll.u32 %s534_s2, 4  ;;  %s318_s11 = int_to_ptr.vmem [resolvable:$true] %s317_s11 }
  0x2d   :  { %380 = vmatprep.subr.bf16.mxu0 %v532_v0  ;;  %400 = vmatprep.subr.bf16.mxu1 %v532_v0  ;;  %s501_s12 = scalar_lea.vmem %s318_s11, 128  ;;  %p506_p2 = scmp.lt.s32.totalorder %s318_s11, %s318_s11 }
  0x2e   :  { %p502_p1 = scmp.ne.s32.totalorder %s318_s11, %s501_s12  ;;  %p507_p3 = scmp.lt.s32.totalorder %s501_s12, %s501_s12 }
  0x30   :  { %381 = vmatpush3.bf16.msra.mxu0 %v426_v3  ;;  %401 = vmatpush3.bf16.msra.mxu1 %v435_v8  ;;  %p508_p4 = por %p507_p3, %p506_p2 }
  0x31   :  { %382 = vmatprep.subr.bf16.mxu0 %v532_v0  ;;  %402 = vmatprep.subr.bf16.mxu1 %v532_v0 }
  0x32   :  { %p509_p5 = pnand %p508_p4, %p502_p1 }
  0x34   :  { %383 = vmatpush3.bf16.msra.mxu0 %v427_v5  ;;  %403 = vmatpush3.bf16.msra.mxu1 %v436_v10 }
  0x35   :  { %384 = vmatprep.subr.bf16.mxu0 %v532_v0  ;;  %404 = vmatprep.subr.bf16.mxu1 %v532_v0 }
  0x38   :  { %385 = vmatpush3.bf16.msra.mxu0 %v428_v7  ;;  %405 = vmatpush3.bf16.msra.mxu1 %v437_v12 }
  0x39   :  { %386 = vmatprep.subr.bf16.mxu0 %v532_v0  ;;  %406 = vmatprep.subr.bf16.mxu1 %v532_v0 }
  0x3c   :  { %387 = vmatpush3.bf16.msra.mxu0 %v429_v9  ;;  %407 = vmatpush3.bf16.msra.mxu1 %v438_v15 }
  0x3d   :  { %388 = vmatprep.subr.bf16.mxu0 %v532_v0  ;;  %408 = vmatprep.subr.bf16.mxu1 %v532_v0 }
  0x40   :  { %389 = vmatpush3.bf16.msra.mxu0 %v430_v11  ;;  %409 = vmatpush3.bf16.msra.mxu1 %v439_v16 }
  0x41   :  { %390 = vmatprep.subr.bf16.mxu0 %v532_v0  ;;  %410 = vmatprep.subr.bf16.mxu1 %v532_v0 }
  0x44   :  { %391 = vmatpush3.bf16.msra.mxu0 %v431_v13  ;;  %411 = vmatpush3.bf16.msra.mxu1 %v440_v17 }
  0x47   :  { %393 = vmatmul.mubr.bf16.vlgmr.msra.gmra.mxu0 %v432_v14 }
 0x107   :  { %v176_v19 = vpop.f32.mrf.mxu0 }
 0x108   :  { %v177_v20 = vadd.f32 %v330_v18, %v176_v19 }
 0x109   :  { %v394_v21 = vpop.f32.mrf.mxu0 }
 0x10a   :  { %v185_v23 = vmul.f32 0.2, %v177_v20  ;;  %vm183_vm1 = vcmp.gt.f32.partialorder %v177_v20, 0.0 }
 0x10b   :  { %v179_v22 = vpop.f32.mrf.mxu0 }
 0x10c   :  { %v180_v24 = vadd.f32 %v330_v18, %v179_v22  ;;  %v187_v27 = vsel %vm183_vm1, %v177_v20, %v185_v23 }
 0x10d   :  { %v395_v25 = vpop.f32.mrf.mxu0 }
 0x10e   :  { %vm184_vm2 = vcmp.gt.f32.partialorder %v180_v24, 0.0  ;;  %v186_v26 = vmul.f32 0.2, %v180_v24 }
 0x110   :  { %v188_v28 = vsel %vm184_vm2, %v180_v24, %v186_v26 }
 0x111   :  { %v189_v29 = vpack.c.bf16 %v188_v28, %v187_v27 }
 0x113   :  { %413 = vmatmul.mubr.bf16.vlgmr.msra.gmra.mxu1 %v189_v29 }
 0x1d3   :  { %v295_v30 = vpop.f32.mrf.mxu1 }
 0x1d4   :  { %v296_v34 = vadd.f32 %v340_v31, %v295_v30 }
 0x1d5   :  { %v414_v32 = vpop.f32.mrf.mxu1 }
 0x1d7   :  { %v298_v33 = vpop.f32.mrf.mxu1 }
 0x1d8   :  { %v299_v35 = vadd.f32 %v340_v31, %v298_v33 }
 0x1d9   :  { %v415_v36 = vpop.f32.mrf.mxu1 }
 0x1da   :  { %v356_v37 = vpack.c.bf16 %v299_v35, %v296_v34 }
 0x1dc   :  { %357 = vst [vmem:[#allocation8] sm:$0xff] %v356_v37  }
 0x1dd   :  { %512 = shalt.err (!%p509_p5)
}
 0x1de   :  { %323 = dma.vmem_to_hbm [thread:$0]  %s318_s11, 128, %s600_s5, [#allocation4], %s529_s23, %s529_s23, %s530_s24  }
 0x1df   :  { %525 = dma.done.wait [#allocation4], 128  }
 0x1e0   :  { %526 = vsyncadd [#allocation4], 4294967168 }
 0x1e1   :  { %327 = vsyncpa [#allocation3], 1 }
 0x1e2   :  { %328 = vsyncpa [#allocation6], 1 }
 0x1e3   :  { %329 = vsyncpa [#allocation4], 1 }

// kernel: tpu_custom_call.1
= control target key start
LH: loop header
LB: loop body
LE: loop exit
PB: predicated region body
PF: predicated region fallthrough
CT: control target
= control target key end

     0   :  { %10 = vsyncpa [#allocation3], 0  ;;  %s595_s0 = inlined_call_operand.hbm [shape: bf16[16,128], index: 0, kind: input, shape index: {}]   ;;  %s596_s1 = inlined_call_operand.hbm [shape: bf16[128,128], index: 1, kind: input, shape index: {}]   ;;  %s597_s2 = inlined_call_operand.vmem [shape: f32[1,128], index: 2, kind: input, shape index: {}]   ;;  %s598_s3 = inlined_call_operand.hbm [shape: bf16[128,128], index: 3, kind: input, shape index: {}]   ;;  %s599_s4 = inlined_call_operand.vmem [shape: f32[1,128], index: 4, kind: input, shape index: {}]   ;;  %s600_s5 = inlined_call_operand.hbm [shape: bf16[16,128], index: 5, kind: output, shape index: {}]  }
   0x1   :  { %11 = vsyncpa [#allocation6], 0 }
   0x2   :  { %12 = vsyncpa [#allocation4], 0  ;;  %s527_s18 = smov [#allocation5]   ;;  %s528_s20 = smov [#allocation2]  }
   0x3   :  { %s30_s19 = sshll.u32 %s527_s18, 4  ;;  %s18_s21 = sshll.u32 %s528_s20, 4  ;;  %s31_s19 = int_to_ptr.vmem [resolvable:$true] %s30_s19  ;;  %s19_s21 = int_to_ptr.vmem [resolvable:$true] %s18_s21 }
   0x4   :  { %s449_s22 = scalar_lea.vmem %s31_s19, 1024  ;;  %p454_p1 = scmp.lt.s32.totalorder %s31_s19, %s31_s19 }
   0x5   :  { %p450_p0 = scmp.ne.s32.totalorder %s31_s19, %s449_s22  ;;  %p455_p2 = scmp.lt.s32.totalorder %s449_s22, %s449_s22 }
   0x7   :  { %p456_p3 = por %p455_p2, %p454_p1 }
   0x9   :  { %p457_p4 = pnand %p456_p3, %p450_p0 }
   0xb   :  { %460 = shalt.err (!%p457_p4)
}
   0xc   :  { %s529_s23 = smov 64   ;;  %s530_s24 = smov 4  }
   0xd   :  { %36 = dma.hbm_to_vmem [thread:$0]  %s596_s1, 1024, %s31_s19, [#allocation6], %s529_s23, %s529_s23, %s530_s24  }
   0xe   :  { %s469_s27 = scalar_lea.vmem %s19_s21, 128  ;;  %p474_p6 = scmp.lt.s32.totalorder %s19_s21, %s19_s21 }
   0xf   :  { %p470_p5 = scmp.ne.s32.totalorder %s19_s21, %s469_s27  ;;  %p475_p7 = scmp.lt.s32.totalorder %s469_s27, %s469_s27 }
  0x11   :  { %p476_p8 = por %p475_p7, %p474_p6 }
  0x13   :  { %p477_p9 = pnand %p476_p8, %p470_p5 }
  0x15   :  { %480 = shalt.err (!%p477_p9)
}
  0x16   :  { %24 = dma.hbm_to_vmem [thread:$0]  %s595_s0, 128, %s19_s21, [#allocation3], %s529_s23, %s529_s23, %s530_s24  }
  0x17   :  { %s531_s30 = smov [#allocation7]  }
  0x18   :  { %s44_s6 = sshll.u32 %s531_s30, 4  ;;  %s45_s6 = int_to_ptr.vmem [resolvable:$true] %s44_s6 }
  0x19   :  { %s489_s7 = scalar_lea.vmem %s45_s6, 1024  ;;  %p494_p11 = scmp.lt.s32.totalorder %s45_s6, %s45_s6 }
  0x1a   :  { %p490_p10 = scmp.ne.s32.totalorder %s45_s6, %s489_s7  ;;  %p495_p12 = scmp.lt.s32.totalorder %s489_s7, %s489_s7 }
  0x1c   :  { %p496_p13 = por %p495_p12, %p494_p11 }
  0x1e   :  { %p497_p0 = pnand %p496_p13, %p490_p10 }
  0x20   :  { %500 = shalt.err (!%p497_p0)
}
  0x21   :  { %50 = dma.hbm_to_vmem [thread:$0]  %s598_s3, 1024, %s45_s6, [#allocation6], %s529_s23, %s529_s23, %s530_s24  }
  0x22   :  { %521 = dma.done.wait [#allocation3], 128  }
  0x23   :  { %522 = vsyncadd [#allocation3], 4294967168 }
  0x24   :  { %523 = dma.done.wait [#allocation6], 2048  }
  0x25   :  { %524 = vsyncadd [#allocation6], 4294965248  ;;  %v532_v0 = vmov 0.0   ;;  %vm533_vm0 = vmmov 0   ;;  %v424_v1 = vld [vmem:[#allocation5 + $0x38] sm:$0xff]   ;;  %v425_v2 = vld [vmem:[#allocation5 + $0x30] sm:$0xff]  }
  0x26   :  { %376 = vmatprep.subr.bf16.mxu0 %v532_v0  ;;  %392 = vmatprep.mubr.msk.bf16.mxu0 %vm533_vm0, %v532_v0  ;;  %v426_v3 = vld [vmem:[#allocation5 + $0x28] sm:$0xff]   ;;  %v433_v4 = vld [vmem:[#allocation7 + $0x38] sm:$0xff]   ;;  %v427_v5 = vld [vmem:[#allocation5 + $0x20] sm:$0xff]  }
  0x27   :  { %396 = vmatprep.subr.bf16.mxu1 %v532_v0  ;;  %412 = vmatprep.mubr.msk.bf16.mxu1 %vm533_vm0, %v532_v0  ;;  %v434_v6 = vld [vmem:[#allocation7 + $0x30] sm:$0xff]   ;;  %v428_v7 = vld [vmem:[#allocation5 + $0x18] sm:$0xff]   ;;  %v435_v8 = vld [vmem:[#allocation7 + $0x28] sm:$0xff]  }
  0x28   :  { %377 = vmatpush3.bf16.msra.mxu0 %v424_v1  ;;  %397 = vmatpush3.bf16.msra.mxu1 %v433_v4  ;;  %v429_v9 = vld [vmem:[#allocation5 + $0x10] sm:$0xff]   ;;  %v436_v10 = vld [vmem:[#allocation7 + $0x20] sm:$0xff]   ;;  %v430_v11 = vld [vmem:[#allocation5 + $0x8] sm:$0xff]  }
  0x29   :  { %378 = vmatprep.subr.bf16.mxu0 %v532_v0  ;;  %398 = vmatprep.subr.bf16.mxu1 %v532_v0  ;;  %v437_v12 = vld [vmem:[#allocation7 + $0x18] sm:$0xff]   ;;  %v431_v13 = vld [vmem:[#allocation5] sm:$0xff]   ;;  %v438_v15 = vld [vmem:[#allocation7 + $0x10] sm:$0xff]  }
  0x2a   :  { %v432_v14 = vld [vmem:[#allocation2] sm:$0xff]   ;;  %v439_v16 = vld [vmem:[#allocation7 + $0x8] sm:$0xff]   ;;  %v440_v17 = vld [vmem:[#allocation7] sm:$0xff]  }
  0x2b   :  { %v330_v18 = vld [vmem:[%s597_s2] ss:$0 sm:$0xff]  ;;  %s534_s2 = smov [#allocation8]  }
  0x2c   :  { %379 = vmatpush3.bf16.msra.mxu0 %v425_v2  ;;  %399 = vmatpush3.bf16.msra.mxu1 %v434_v6  ;;  %v340_v31 = vld [vmem:[%s599_s4] ss:$0 sm:$0xff]  ;;  %s317_s11 = sshll.u32 %s534_s2, 4  ;;  %s318_s11 = int_to_ptr.vmem [resolvable:$true] %s317_s11 }
  0x2d   :  { %380 = vmatprep.subr.bf16.mxu0 %v532_v0  ;;  %400 = vmatprep.subr.bf16.mxu1 %v532_v0  ;;  %s501_s12 = scalar_lea.vmem %s318_s11, 128  ;;  %p506_p2 = scmp.lt.s32.totalorder %s318_s11, %s318_s11 }
  0x2e   :  { %p502_p1 = scmp.ne.s32.totalorder %s318_s11, %s501_s12  ;;  %p507_p3 = scmp.lt.s32.totalorder %s501_s12, %s501_s12 }
  0x30   :  { %381 = vmatpush3.bf16.msra.mxu0 %v426_v3  ;;  %401 = vmatpush3.bf16.msra.mxu1 %v435_v8  ;;  %p508_p4 = por %p507_p3, %p506_p2 }
  0x31   :  { %382 = vmatprep.subr.bf16.mxu0 %v532_v0  ;;  %402 = vmatprep.subr.bf16.mxu1 %v532_v0 }
  0x32   :  { %p509_p5 = pnand %p508_p4, %p502_p1 }
  0x34   :  { %383 = vmatpush3.bf16.msra.mxu0 %v427_v5  ;;  %403 = vmatpush3.bf16.msra.mxu1 %v436_v10 }
  0x35   :  { %384 = vmatprep.subr.bf16.mxu0 %v532_v0  ;;  %404 = vmatprep.subr.bf16.mxu1 %v532_v0 }
  0x38   :  { %385 = vmatpush3.bf16.msra.mxu0 %v428_v7  ;;  %405 = vmatpush3.bf16.msra.mxu1 %v437_v12 }
  0x39   :  { %386 = vmatprep.subr.bf16.mxu0 %v532_v0  ;;  %406 = vmatprep.subr.bf16.mxu1 %v532_v0 }
  0x3c   :  { %387 = vmatpush3.bf16.msra.mxu0 %v429_v9  ;;  %407 = vmatpush3.bf16.msra.mxu1 %v438_v15 }
  0x3d   :  { %388 = vmatprep.subr.bf16.mxu0 %v532_v0  ;;  %408 = vmatprep.subr.bf16.mxu1 %v532_v0 }
  0x40   :  { %389 = vmatpush3.bf16.msra.mxu0 %v430_v11  ;;  %409 = vmatpush3.bf16.msra.mxu1 %v439_v16 }
  0x41   :  { %390 = vmatprep.subr.bf16.mxu0 %v532_v0  ;;  %410 = vmatprep.subr.bf16.mxu1 %v532_v0 }
  0x44   :  { %391 = vmatpush3.bf16.msra.mxu0 %v431_v13  ;;  %411 = vmatpush3.bf16.msra.mxu1 %v440_v17 }
  0x47   :  { %393 = vmatmul.mubr.bf16.vlgmr.msra.gmra.mxu0 %v432_v14 }
 0x107   :  { %v176_v19 = vpop.f32.mrf.mxu0 }
 0x108   :  { %v177_v20 = vadd.f32 %v330_v18, %v176_v19 }
 0x109   :  { %v394_v21 = vpop.f32.mrf.mxu0 }
 0x10a   :  { %v185_v23 = vmul.f32 0.2, %v177_v20  ;;  %vm183_vm1 = vcmp.gt.f32.partialorder %v177_v20, 0.0 }
 0x10b   :  { %v179_v22 = vpop.f32.mrf.mxu0 }
 0x10c   :  { %v180_v24 = vadd.f32 %v330_v18, %v179_v22  ;;  %v187_v27 = vsel %vm183_vm1, %v177_v20, %v185_v23 }
 0x10d   :  { %v395_v25 = vpop.f32.mrf.mxu0 }
 0x10e   :  { %vm184_vm2 = vcmp.gt.f32.partialorder %v180_v24, 0.0  ;;  %v186_v26 = vmul.f32 0.2, %v180_v24 }
 0x110   :  { %v188_v28 = vsel %vm184_vm2, %v180_v24, %v186_v26 }
 0x111   :  { %v189_v29 = vpack.c.bf16 %v188_v28, %v187_v27 }
 0x113   :  { %413 = vmatmul.mubr.bf16.vlgmr.msra.gmra.mxu1 %v189_v29 }
 0x1d3   :  { %v295_v30 = vpop.f32.mrf.mxu1 }
 0x1d4   :  { %v296_v34 = vadd.f32 %v340_v31, %v295_v30 }
 0x1d5   :  { %v414_v32 = vpop.f32.mrf.mxu1 }
 0x1d7   :  { %v298_v33 = vpop.f32.mrf.mxu1 }
 0x1d8   :  { %v299_v35 = vadd.f32 %v340_v31, %v298_v33 }
 0x1d9   :  { %v415_v36 = vpop.f32.mrf.mxu1 }
 0x1da   :  { %v356_v37 = vpack.c.bf16 %v299_v35, %v296_v34 }
 0x1dc   :  { %357 = vst [vmem:[#allocation8] sm:$0xff] %v356_v37  }
 0x1dd   :  { %512 = shalt.err (!%p509_p5)
}
 0x1de   :  { %323 = dma.vmem_to_hbm [thread:$0]  %s318_s11, 128, %s600_s5, [#allocation4], %s529_s23, %s529_s23, %s530_s24  }
 0x1df   :  { %525 = dma.done.wait [#allocation4], 128  }
 0x1e0   :  { %526 = vsyncadd [#allocation4], 4294967168 }
 0x1e1   :  { %327 = vsyncpa [#allocation3], 1 }
 0x1e2   :  { %328 = vsyncpa [#allocation6], 1 }
 0x1e3   :  { %329 = vsyncpa [#allocation4], 1 }

</bundles_post_ra>
